<compile_context>
chip_gen: v7x
topology: tpu7x:2x2x1
jax: 0.10.0
libtpu: 0.0.40
codegen_flags: <defaults>
</compile_context>

<pallas_src>
import functools

import jax
import jax.numpy as jnp
from jax import lax
from jax.experimental import pallas as pl
from jax.experimental.pallas import tpu as pltpu


def _round_up(x, m):
    return ((x + m - 1) // m) * m


def _cdiv(a, b):
    return (a + b - 1) // b


def _vmem_capacity_bytes():
    """Generation-aware VMEM capacity; conservative (v7x) fallback."""
    try:
        info = pltpu.get_tpu_info()
        cap = getattr(info, "vmem_capacity_bytes", None)
        if cap:
            return int(cap)
    except Exception:
        pass
    return 64 << 20  # v7x has 64 MiB per TensorCore; safe everywhere.


def _partial_gram_kernel(x_ref, g_ref, *, rem, tile, tiles_per_core,
                         num_tiles, grid_p):
    """Accumulate the (B, B) Gram of one feature range into g_ref (f32)."""
    p = pl.program_id(0)
    k = pl.program_id(1)
    t = p * tiles_per_core + k  # global feature-tile index (may over-run)

    @pl.when(k == 0)
    def _():
        g_ref[...] = jnp.zeros_like(g_ref)

    def accum(xv):
        g_ref[...] += lax.dot_general(
            xv, xv, dimension_numbers=(((1,), (1,)), ((), ())),
            preferred_element_type=jnp.float32)

    full_cover = (rem == tile) and (grid_p * tiles_per_core == num_tiles)

    if full_cover:
        # Every grid step maps to a distinct, fully-valid tile.
        accum(x_ref[...])
    else:
        # Interior tiles: full-width dot straight from the VMEM buffer.
        @pl.when(t < num_tiles - 1)
        def _():
            accum(x_ref[...])

        # Tail tile: only the first `rem` feature columns are valid (the
        # boundary-block DMA leaves the remaining lanes undefined).
        @pl.when(t == num_tiles - 1)
        def _():
            rem_lo = (rem // 128) * 128
            if rem_lo > 0:
                accum(x_ref[:, :rem_lo])
            part = rem - rem_lo
            if part > 0:
                xb = x_ref[:, rem_lo:rem_lo + 128]
                lane = lax.broadcasted_iota(jnp.int32, xb.shape, 1)
                accum(jnp.where(lane < part, xb, jnp.zeros_like(xb)))
        # Tiles with t >= num_tiles (over-split parallel axis) contribute nothing.


def _partial_grams(x2, *, vmem_budget, target_step_bytes=4 << 20):
    """x2: (B, D) -> raw Gram x2 @ x2^T as (B, B) f32 via a streaming kernel."""
    b, d = x2.shape
    itemsize = jnp.dtype(x2.dtype).itemsize
    # Sublane padding of a (B, tile) block in VMEM: 8 rows for 4-byte dtypes,
    # 16 for 2-byte dtypes.
    sub = max(8, 32 // itemsize)
    rows_pad = _round_up(b, sub)

    d_aligned = _round_up(max(d, 1), 128)
    # Amortize the ~0.35us grid-step overhead: >= ~4 MiB of real HBM bytes/step.
    tile_target = max(2048, _cdiv(target_step_bytes, max(1, b * itemsize)))
    # Double-buffered input block must fit the VMEM budget (padded rows!).
    tile_vmem_max = max(128, vmem_budget // (2 * rows_pad * itemsize))
    tile = min(d_aligned, tile_target, tile_vmem_max)
    tile = max(128, (tile // 128) * 128)
    # Minimize tail waste: rebalance the tile over the resulting tile count.
    nt = _cdiv(d_aligned, tile)
    tile = _round_up(_cdiv(d_aligned, nt), 128)
    nt = _cdiv(d, tile)
    rem = d - (nt - 1) * tile

    # Split the feature loop across two cores when there is enough work
    # (uses both TensorCores on v7x; harmless serial split elsewhere).
    grid_p = 2 if nt >= 2 else 1
    tiles_per_core = _cdiv(nt, grid_p)

    kernel = functools.partial(
        _partial_gram_kernel, rem=rem, tile=tile,
        tiles_per_core=tiles_per_core, num_tiles=nt, grid_p=grid_p)

    def in_map(p, k):
        # Clamp over-run tiles to the last valid tile (their contribution is
        # skipped in-kernel).
        return (0, jnp.minimum(p * tiles_per_core + k, nt - 1))

    g = pl.pallas_call(
        kernel,
        out_shape=jax.ShapeDtypeStruct((grid_p, b, b), jnp.float32),
        grid=(grid_p, tiles_per_core),
        in_specs=[pl.BlockSpec((b, tile), in_map)],
        out_specs=pl.BlockSpec((None, b, b), lambda p, k: (p, 0, 0)),
        compiler_params=pltpu.CompilerParams(
            dimension_semantics=("parallel", "arbitrary"),
            vmem_limit_bytes=int(vmem_budget)),
    )(x2)
    return jnp.sum(g, axis=0)  # (B, B) f32


def _normalized_gram(g):
    """Double-center a raw Gram and normalize rows/cols by the centered norms."""
    row = jnp.mean(g, axis=1, keepdims=True)
    col = jnp.mean(g, axis=0, keepdims=True)
    grand = jnp.mean(g)
    gc = g - row - col + grand                      # exact centered Gram
    diag = jnp.maximum(jnp.diagonal(gc), 0.0)
    n = jnp.sqrt(diag) + 1e-6                       # ||x_i - mean||_2 + eps
    return gc / (n[:, None] * n[None, :])


def diff_loss(x, y, *, cast_to_bf16=False, target_step_bytes=4 << 20):
    """Pallas implementation of DiffLoss.forward(x, y). Returns a scalar f32."""
    b = x.shape[0]
    assert y.shape[0] == b
    x2 = x.reshape(b, -1)
    y2 = y.reshape(b, -1)
    if cast_to_bf16:
        # Halves HBM traffic on a bandwidth-bound kernel; Gram accumulation
        # stays f32 via preferred_element_type.
        x2 = x2.astype(jnp.bfloat16)
        y2 = y2.astype(jnp.bfloat16)
    d1, d2 = x2.shape[1], y2.shape[1]

    # ~70% of physical VMEM: ~45 MiB on v7x (64 MiB), ~90 MiB on v5e/v6e (128 MiB).
    vmem_budget = int(_vmem_capacity_bytes() * 0.7)

    gx = _partial_grams(x2, vmem_budget=vmem_budget,
                        target_step_bytes=target_step_bytes)
    gy = _partial_grams(y2, vmem_budget=vmem_budget,
                        target_step_bytes=target_step_bytes)

    gxn = _normalized_gram(gx)
    gyn = _normalized_gram(gy)
    # sum(Gx_n * Gy_n) == sum((x_l2^T @ y_l2)^2); divide by D1*D2 for the mean.
    return jnp.sum(gxn * gyn) / (float(d1) * float(d2))


def diff_loss_ref(x, y):
    """Pure-JAX reference (direct D1 x D2 formulation) for correctness checking."""
    b = x.shape[0]
    x = x.reshape(b, -1).astype(jnp.float32)
    y = y.reshape(b, -1).astype(jnp.float32)
    x = x - jnp.mean(x, axis=0, keepdims=True)
    y = y - jnp.mean(y, axis=0, keepdims=True)
    x_l2 = x / (jnp.linalg.norm(x, axis=1, keepdims=True) + 1e-6)
    y_l2 = y / (jnp.linalg.norm(y, axis=1, keepdims=True) + 1e-6)
    m = x_l2.T @ y_l2
    return jnp.mean(m ** 2)


if __name__ == "__main__":
    # DiffLoss has no parameters; just build deterministic inputs.
    key = jax.random.PRNGKey(0)
    kx, ky = jax.random.split(key)
    # NCHW-style inputs (flattened to (B, C*H*W) inside diff_loss); add a small
    # bias to exercise the double-centering path with non-zero-mean columns.
    x = jax.random.normal(kx, (2, 4, 16, 16), dtype=jnp.float32) + 0.25
    y = jax.random.normal(ky, (2, 4, 16, 16), dtype=jnp.float32) - 0.10

    out = jax.block_until_ready(diff_loss(x, y))
    ref = jax.block_until_ready(diff_loss_ref(x, y))
    assert jnp.allclose(out, ref, rtol=1e-3, atol=1e-6), (out, ref)

    # Unequal feature dims + a non-128-multiple feature count (tail-tile path).
    y_odd = jax.random.normal(ky, (2, 3, 10, 10), dtype=jnp.float32)
    out2 = jax.block_until_ready(diff_loss(x, y_odd))
    ref2 = jax.block_until_ready(diff_loss_ref(x, y_odd))
    assert jnp.allclose(out2, ref2, rtol=1e-3, atol=1e-6), (out2, ref2)

    print("KERNEL_OK")
</pallas_src>

<mosaic_0001>
module attributes {stable_mosaic.version = 11 : i64} {
  func.func @_partial_gram_kernel(%arg0: i32, %arg1: i32, %arg2: memref<2x1024xf32, #tpu.memory_space<vmem>>, %arg3: memref<1x2x2xf32, #tpu.memory_space<vmem>>) attributes {dimension_semantics = [#tpu.dimension_semantics<parallel>, #tpu.dimension_semantics<arbitrary>], iteration_bounds = array<i64: 1, 1>, scalar_prefetch = 0 : i64, scratch_operands = 0 : i64, tpu.core_type = #tpu.core_type<tc>, window_params = [{transform_indices = @transform_0, window_bounds = array<i64: 2, 1024>}, {transform_indices = @transform_1, window_bounds = array<i64: 1, 2, 2>}]} {
    %c0_i32 = arith.constant 0 : i32
    %0 = arith.cmpi eq, %arg1, %c0_i32 : i32
    %1 = arith.extui %0 : i1 to i32
    %c0_i32_0 = arith.constant 0 : i32
    %2 = arith.cmpi ne, %1, %c0_i32_0 : i32
    scf.if %2 {
      %cst_8 = arith.constant 0.000000e+00 : f32
      %11 = vector.broadcast %cst_8 : f32 to vector<2x2xf32>
      %c0_9 = arith.constant 0 : index
      %c0_10 = arith.constant 0 : index
      %c0_11 = arith.constant 0 : index
      %12 = vector.load %arg3[%c0_9, %c0_10, %c0_11] : memref<1x2x2xf32, #tpu.memory_space<vmem>>, vector<1x2x2xf32>
      %13 = vector.shape_cast %12 : vector<1x2x2xf32> to vector<2x2xf32>
      %14 = vector.shape_cast %11 : vector<2x2xf32> to vector<1x2x2xf32>
      tpu.vector_store %arg3[%c0_9, %c0_10, %c0_11], %14 {strides = array<i32>} : memref<1x2x2xf32, #tpu.memory_space<vmem>>, vector<1x2x2xf32>,
    } else {
    }
    %c0 = arith.constant 0 : index
    %c0_1 = arith.constant 0 : index
    %3 = vector.load %arg2[%c0, %c0_1] : memref<2x1024xf32, #tpu.memory_space<vmem>>, vector<2x1024xf32>
    %c0_2 = arith.constant 0 : index
    %c0_3 = arith.constant 0 : index
    %c0_4 = arith.constant 0 : index
    %4 = vector.load %arg3[%c0_2, %c0_3, %c0_4] : memref<1x2x2xf32, #tpu.memory_space<vmem>>, vector<1x2x2xf32>
    %5 = vector.shape_cast %4 : vector<1x2x2xf32> to vector<2x2xf32>
    %cst = arith.constant dense<0.000000e+00> : vector<2x2xf32>
    %6 = tpu.matmul %3, %3, %cst {dimension_numbers = #tpu.dot_dimension_numbers<[1], [1], [0], [0], [0, 0, 1, 0], [], []>} : vector<2x1024xf32>, vector<2x1024xf32>, vector<2x2xf32> -> vector<2x2xf32>
    %7 = arith.addf %5, %6 : vector<2x2xf32>
    %c0_5 = arith.constant 0 : index
    %c0_6 = arith.constant 0 : index
    %c0_7 = arith.constant 0 : index
    %8 = vector.load %arg3[%c0_5, %c0_6, %c0_7] : memref<1x2x2xf32, #tpu.memory_space<vmem>>, vector<1x2x2xf32>
    %9 = vector.shape_cast %8 : vector<1x2x2xf32> to vector<2x2xf32>
    %10 = vector.shape_cast %7 : vector<2x2xf32> to vector<1x2x2xf32>
    tpu.vector_store %arg3[%c0_5, %c0_6, %c0_7], %10 {strides = array<i32>} : memref<1x2x2xf32, #tpu.memory_space<vmem>>, vector<1x2x2xf32>,
    return
  }
  func.func @transform_0(%arg0: i32, %arg1: i32) -> (i32, i32) {
    %c1_i32 = arith.constant 1 : i32
    %0 = arith.muli %arg0, %c1_i32 : i32
    %1 = arith.addi %0, %arg1 : i32
    %c0_i32 = arith.constant 0 : i32
    %2 = arith.minsi %1, %c0_i32 : i32
    %c0_i32_0 = arith.constant 0 : i32
    %c0_i32_1 = arith.constant 0 : i32
    return %c0_i32_0, %2 : i32, i32
  }
  func.func @transform_1(%arg0: i32, %arg1: i32) -> (i32, i32, i32) {
    %c0_i32 = arith.constant 0 : i32
    %c0_i32_0 = arith.constant 0 : i32
    %c0_i32_1 = arith.constant 0 : i32
    return %arg0, %c0_i32, %c0_i32_0 : i32, i32, i32
  }
}

</mosaic_0001>

<bundles_post_ra>
// kernel: tpu_custom_call.1
= control target key start
LH: loop header
LB: loop body
LE: loop exit
PB: predicated region body
PF: predicated region fallthrough
CT: control target
= control target key end

     0   :  { %6 = vsyncpa [#allocation3], 0  ;;  %s478_s0 = inlined_call_operand.hbm [shape: f32[2,1024], index: 0, kind: input, shape index: {}]   ;;  %s479_s1 = inlined_call_operand.hbm [shape: f32[1,2,2], index: 1, kind: output, shape index: {}]  }
   0x1   :  { %7 = vsyncpa [#allocation4], 0  ;;  %s438_s6 = smov [#allocation2]   ;;  %s390_s10 = scalar_lea.hbm %s478_s0, 256 }
   0x2   :  { %s20_s7 = sshll.u32 %s438_s6, 4  ;;  %p391_p0 = scmp.ne.s32.totalorder %s478_s0, %s390_s10  ;;  %s21_s7 = int_to_ptr.vmem [resolvable:$true] %s20_s7 }
   0x3   :  { %p394_p1 = scmp.lt.u32.totalorder %s390_s10, %s478_s0 }
   0x5   :  { %p396_p2 = pnand %p394_p1, %p391_p0 }
   0x7   :  { %399 = shalt.err (!%p396_p2)
}
   0x8   :  { %s400_s15 = scalar_lea.vmem %s21_s7, 256  ;;  %p405_p4 = scmp.lt.s32.totalorder %s21_s7, %s21_s7 }
   0x9   :  { %p401_p3 = scmp.ne.s32.totalorder %s21_s7, %s400_s15  ;;  %p406_p5 = scmp.lt.s32.totalorder %s400_s15, %s400_s15 }
   0xb   :  { %p407_p6 = por %p406_p5, %p405_p4 }
   0xd   :  { %p408_p7 = pnand %p407_p6, %p401_p3 }
   0xf   :  { %411 = shalt.err (!%p408_p7)
}
  0x10   :  { %23 = dma.hbm_to_vmem [thread:$0]  %s478_s0, 256, %s21_s7, [#allocation3]  }
  0x11   :  { %434 = dma.done.wait [#allocation3], 256  }
  0x12   :  { %435 = vsyncadd [#allocation3], 4294967040  ;;  %vm35_vm0 = vcmask 9216   ;;  %v46_v0 = vlaneseq  ;;  %v439_v1 = vmov 0.0   ;;  %v440_v2 = vmov 1983009808  }
  0x13   :  { %36 = vst.msk [vmem:[#allocation5] sm:$0x3] %vm35_vm0, %v439_v1  ;;  %v44_v3 = vunpack.c.l.s4 %v440_v2  ;;  %v37_v7 = vld [vmem:[#allocation2] sm:$0xff]  ;;  %v38_v8 = vld [vmem:[#allocation2 + $0x8] sm:$0xff]  ;;  %s441_s0 = smov [#allocation5]  }
  0x14   :  { %v47_v4 = vshrl.u32 %v46_v0, 7  ;;  %v42_v10 = vcombine.high %v37_v7, %v37_v7  ;;  %v59_v12 = vcombine.high %v38_v8, %v38_v8  ;;  %s373_s18 = sshll.u32 %s441_s0, 4  ;;  %s374_s18 = int_to_ptr.vmem [resolvable:$true] %s373_s18 }
  0x15   :  { %v45_v5 = vunpack.c.0.s8 %v44_v3  ;;  %s412_s19 = scalar_lea.vmem %s374_s18, 32  ;;  %p417_p9 = scmp.lt.s32.totalorder %s374_s18, %s374_s18 }
  0x16   :  { %p413_p8 = scmp.ne.s32.totalorder %s374_s18, %s412_s19  ;;  %p418_p10 = scmp.lt.s32.totalorder %s412_s19, %s412_s19 }
  0x17   :  { %v48_v6 = vsub.s32 %v45_v5, %v47_v4 }
  0x18   :  { %p419_p11 = por %p418_p10, %p417_p9 }
  0x19   :  { %v49_v9 = vrot.slane %v37_v7, %v48_v6  ;;  %v66_v11 = vrot.slane %v38_v8, %v48_v6  ;;  %v56_v14 = vrot.slane %v42_v10, %v48_v6  ;;  %v73_v16 = vrot.slane %v59_v12, %v48_v6 }
  0x1a   :  { %v39_v27 = vld [vmem:[#allocation5] sm:$0x3]  ;;  %p420_p12 = pnand %p419_p11, %p413_p8 }
  0x1b   :  { %v57_v13 = vcombine.high %v49_v9, %v49_v9  ;;  %v74_v15 = vcombine.high %v66_v11, %v66_v11  ;;  %v58_v17 = vcombine.high %v56_v14, %v56_v14  ;;  %v75_v18 = vcombine.high %v73_v16, %v73_v16 }
  0x1d   :  { %84 = vmatprep.subr.mxu0 %v57_v13  ;;  %148 = vmatprep.mubr.f32.mxu0 %v57_v13 }
  0x1e   :  { %85 = vmatpush1.xpose.msra.mxu0 %v49_v9  ;;  %154 = vmatprep.subr.mxu1 %v58_v17 }
  0x1f   :  { %224 = vmatprep.subr.mxu0 %v74_v15  ;;  %155 = vmatpush1.xpose.msra.mxu1 %v56_v14 }
  0x20   :  { %218 = vmatprep.mubr.f32.mxu1 %v58_v17  ;;  %294 = vmatprep.subr.mxu1 %v75_v18 }
  0x21   :  { %149 = vmatmul.mubr.f32.vlgmr.msra.gmra.mrb[0].mxu0 %v49_v9 }
  0x22   :  { %225 = vmatpush1.xpose.msra.mxu0 %v66_v11  ;;  %288 = vmatprep.mubr.f32.mxu0 %v74_v15 }
  0x23   :  { %219 = vmatmul.mubr.f32.vlgmr.msra.gmra.mrb[0].mxu1 %v56_v14 }
  0x24   :  { %295 = vmatpush1.xpose.msra.mxu1 %v73_v16  ;;  %358 = vmatprep.mubr.f32.mxu1 %v75_v18 }
  0x25   :  { %289 = vmatmul.mubr.f32.vlgmr.msra.gmra.mrb[2].mxu0 %v66_v11 }
  0x27   :  { %359 = vmatmul.mubr.f32.vlgmr.msra.gmra.mrb[2].mxu1 %v73_v16 }
  0xf4   :  { %v150_v19 = vpop.f32.mrb[0].mxu0 }
  0xf5   :  { %v152_v20 = vpop.f32.mrb[1].mxu0 }
  0xf6   :  { %v220_v21 = vpop.f32.mrb[0].mxu1 }
  0xf7   :  { %v221_v22 = vadd.f32 %v220_v21, %v150_v19  ;;  %v222_v23 = vpop.f32.mrb[1].mxu1 }
  0xf8   :  { %v290_v24 = vpop.f32.mrb[2].mxu0 }
  0xf9   :  { %v291_v25 = vadd.f32 %v290_v24, %v221_v22  ;;  %v292_v26 = vpop.f32.mrb[3].mxu0 }
  0xfa   :  { %v360_v28 = vpop.f32.mrb[2].mxu1 }
  0xfb   :  { %v361_v29 = vadd.f32 %v360_v28, %v291_v25  ;;  %v362_v30 = vpop.f32.mrb[3].mxu1 }
  0xfd   :  { %v364_v31 = vadd.f32 %v361_v29, %v39_v27 }
  0xff   :  { %366 = vst.msk [vmem:[#allocation5] sm:$0x3] %vm35_vm0, %v364_v31 }
 0x100   :  { %423 = shalt.err (!%p420_p12)
}
 0x101   :  { %s424_s22 = scalar_lea.hbm %s479_s1, 32 }
 0x102   :  { %p425_p13 = scmp.ne.s32.totalorder %s479_s1, %s424_s22  ;;  %p428_p0 = scmp.lt.u32.totalorder %s424_s22, %s479_s1 }
 0x104   :  { %p430_p1 = pnand %p428_p0, %p425_p13 }
 0x106   :  { %433 = shalt.err (!%p430_p1)
}
 0x107   :  { %376 = dma.vmem_to_hbm [thread:$0]  %s374_s18, 32, %s479_s1, [#allocation4]  }
 0x108   :  { %436 = dma.done.wait [#allocation4], 32  }
 0x109   :  { %437 = vsyncadd [#allocation4], 4294967264 }
 0x10a   :  { %380 = vsyncpa [#allocation3], 1 }
 0x10b   :  { %381 = vsyncpa [#allocation4], 1 }

</bundles_post_ra>
